<compile_context>
chip_gen: v7x
topology: tpu7x:2x2x1
jax: 0.10.0
libtpu: 0.0.40
codegen_flags: <defaults>
</compile_context>

<pallas_src>
import functools

import jax
import jax.numpy as jnp
from jax import lax
from jax.experimental import pallas as pl
from jax.experimental.pallas import tpu as pltpu


def _i32(v):
    """Python int -> int32 constant with two's-complement wrap (hash constants)."""
    v &= 0xFFFFFFFF
    if v >= 1 << 31:
        v -= 1 << 32
    return jnp.int32(v)


def _hash_bits(shape, row_offset, seed, salt):
    """Counter-based 32-bit mix (lowbias32-style): pseudo-random int32 per element."""
    rows = lax.broadcasted_iota(jnp.int32, shape, 0) + row_offset
    cols = lax.broadcasted_iota(jnp.int32, shape, 1)
    x = rows * _i32(0x9E3779B1)
    x = x ^ (cols * _i32(0x85EBCA77))
    x = x ^ (seed * _i32(0xC2B2AE3D))
    x = x + _i32(salt)
    x = x ^ lax.shift_right_logical(x, _i32(16))
    x = x * _i32(0x7FEB352D)
    x = x ^ lax.shift_right_logical(x, _i32(15))
    x = x * _i32(0x846CA68B)
    x = x ^ lax.shift_right_logical(x, _i32(16))
    return x


def _dropout(h, p, seed, row_offset, salt):
    """F.dropout training semantics: keep w.p. (1-p), scale kept by 1/(1-p)."""
    if p <= 0.0:
        return h
    bits = _hash_bits(h.shape, row_offset, seed, salt)
    r31 = lax.shift_right_logical(bits, _i32(1))          # uniform in [0, 2^31)
    thr = jnp.int32(min(int(p * float(1 << 31)), (1 << 31) - 1))
    scale = jnp.float32(1.0 / (1.0 - p))
    return jnp.where(r31 >= thr, h * scale, jnp.float32(0.0))


def dnnx2_kernel(seed_ref,
                 x_ref, w0_ref, b0_ref, w1_ref, b1_ref, w2_ref, b2_ref,
                 o_ref, *, p, tm):
    row0 = pl.program_id(0) * tm       # global row offset of this batch tile
    seed = seed_ref[0]

    x = x_ref[...]                     # (tm, Fp) bf16

    # fc0 -> relu -> dropout
    h0 = jnp.dot(x, w0_ref[...], preferred_element_type=jnp.float32) + b0_ref[...]
    h0 = jnp.maximum(h0, 0.0)
    h0 = _dropout(h0, p, seed, row0, salt=0x3C6EF372)
    h0 = h0.astype(w1_ref.dtype)

    # fc1 -> relu -> dropout
    h1 = jnp.dot(h0, w1_ref[...], preferred_element_type=jnp.float32) + b1_ref[...]
    h1 = jnp.maximum(h1, 0.0)
    h1 = _dropout(h1, p, seed, row0, salt=0x61C88647)
    h1 = h1.astype(w2_ref.dtype)

    # fc2 (no activation / no dropout), lane-dense f32 store
    out = jnp.dot(h1, w2_ref[...], preferred_element_type=jnp.float32) + b2_ref[...]
    o_ref[...] = out.astype(o_ref.dtype)


def _round_up(n, m):
    return (n + m - 1) // m * m


def _pad2d(a, rows, cols, dtype):
    a = a.astype(dtype)
    return jnp.pad(a, ((0, rows - a.shape[0]), (0, cols - a.shape[1])))


def dnnx2_forward(x, params, *, dropouts=0.5, seed=0, tile_m=256):
    """DNNx2_regressor.forward (training-mode dropout).  Pass dropouts=0.0 for eval."""
    w0, b0, w1, b1, w2, b2 = params        # PyTorch layout: W (out, in), b (out,)
    B = x.shape[0]
    x2d = x.reshape(B, -1)                 # torch.flatten(X, start_dim=1)
    F = x2d.shape[1]
    H1, H2, NO = w0.shape[0], w1.shape[0], w2.shape[0]

    # Lane-dense padding: all feature dims padded to multiples of 128.
    Fp, H1p, H2p, NOp = (_round_up(d, 128) for d in (F, H1, H2, NO))

    # Batch tile: multiple of 8 sublanes, up to tile_m rows to feed the MXU.
    TM = min(tile_m, _round_up(B, 8))
    Bp = _round_up(B, TM)

    # bf16 MXU operands (f32 accumulation in-kernel); biases stay f32.
    xp = _pad2d(x2d, Bp, Fp, jnp.bfloat16)
    w0p = _pad2d(w0.T, Fp, H1p, jnp.bfloat16)
    w1p = _pad2d(w1.T, H1p, H2p, jnp.bfloat16)
    w2p = _pad2d(w2.T, H2p, NOp, jnp.bfloat16)
    b0p = _pad2d(b0.reshape(1, -1), 1, H1p, jnp.float32)
    b1p = _pad2d(b1.reshape(1, -1), 1, H2p, jnp.float32)
    b2p = _pad2d(b2.reshape(1, -1), 1, NOp, jnp.float32)

    seed_arr = jnp.array([seed], dtype=jnp.int32)
    kernel = functools.partial(dnnx2_kernel, p=float(dropouts), tm=TM)

    # VMEM budget: resident weights/biases + double-buffered in/out tiles + activations.
    est = ((Fp * H1p + H1p * H2p + H2p * NOp) * 2
           + (H1p + H2p + NOp) * 4
           + 2 * TM * Fp * 2 + 2 * TM * NOp * 4
           + 2 * TM * (H1p + H2p) * 4)
    vmem_limit = int(min(48 * 2**20, max(8 * 2**20, 2 * est)))

    grid_spec = pltpu.PrefetchScalarGridSpec(
        num_scalar_prefetch=1,
        grid=(Bp // TM,),
        in_specs=[
            pl.BlockSpec((TM, Fp), lambda i, s: (i, 0)),     # x: tiled over batch
            pl.BlockSpec((Fp, H1p), lambda i, s: (0, 0)),    # weights/biases: VMEM-resident
            pl.BlockSpec((1, H1p), lambda i, s: (0, 0)),
            pl.BlockSpec((H1p, H2p), lambda i, s: (0, 0)),
            pl.BlockSpec((1, H2p), lambda i, s: (0, 0)),
            pl.BlockSpec((H2p, NOp), lambda i, s: (0, 0)),
            pl.BlockSpec((1, NOp), lambda i, s: (0, 0)),
        ],
        out_specs=pl.BlockSpec((TM, NOp), lambda i, s: (i, 0)),
    )

    out_pad = pl.pallas_call(
        kernel,
        out_shape=jax.ShapeDtypeStruct((Bp, NOp), jnp.float32),
        grid_spec=grid_spec,
        compiler_params=pltpu.CompilerParams(
            dimension_semantics=("parallel",),
            vmem_limit_bytes=vmem_limit),
    )(seed_arr, xp, w0p, b0p, w1p, b1p, w2p, b2p)

    return out_pad[:B, :NO]


def init_params(key, n_features, layer_nodes):
    """PyTorch nn.Linear-style init: W (out, in), b (out,), U(-1/sqrt(fan_in), +)."""
    dims = [n_features] + list(layer_nodes)
    params = []
    for i in range(3):
        key, kw, kb = jax.random.split(key, 3)
        fan_in, fan_out = dims[i], dims[i + 1]
        bound = 1.0 / (fan_in ** 0.5)
        w = jax.random.uniform(kw, (fan_out, fan_in), jnp.float32, -bound, bound)
        b = jax.random.uniform(kb, (fan_out,), jnp.float32, -bound, bound)
        params += [w, b]
    return tuple(params)


if __name__ == "__main__":
    key = jax.random.PRNGKey(0)
    kx, kp = jax.random.split(key)

    # Small shapes consistent with the module: (B, C, H, W) flattened to 64 features.
    B, C, H, W = 8, 4, 4, 4
    n_features = C * H * W
    layer_nodes = [32, 16, 4]

    x = jax.random.normal(kx, (B, C, H, W), dtype=jnp.float32)
    params = init_params(kp, n_features, layer_nodes)

    # Training-mode forward (dropout active, p=0.5).
    out = dnnx2_forward(x, params, dropouts=0.5, seed=0)
    jax.block_until_ready(out)
    assert out.shape == (B, layer_nodes[-1])
    assert bool(jnp.all(jnp.isfinite(out)))

    # Eval-mode forward (p=0.0) checked against a pure-JAX reference on the same
    # bf16-operand / f32-accumulation path.
    out_eval = dnnx2_forward(x, params, dropouts=0.0)
    w0, b0, w1, b1, w2, b2 = params
    xf = x.reshape(B, -1).astype(jnp.bfloat16)
    r = jnp.maximum(jnp.dot(xf, w0.T.astype(jnp.bfloat16),
                            preferred_element_type=jnp.float32) + b0, 0.0)
    r = jnp.maximum(jnp.dot(r.astype(jnp.bfloat16), w1.T.astype(jnp.bfloat16),
                            preferred_element_type=jnp.float32) + b1, 0.0)
    ref = jnp.dot(r.astype(jnp.bfloat16), w2.T.astype(jnp.bfloat16),
                  preferred_element_type=jnp.float32) + b2
    jax.block_until_ready(out_eval)
    assert jnp.allclose(out_eval, ref, rtol=5e-2, atol=5e-2), "eval-mode mismatch vs reference"

    print("KERNEL_OK")
</pallas_src>

<mosaic_0001>
module attributes {stable_mosaic.version = 11 : i64} {
  func.func @dnnx2_kernel(%arg0: i32, %arg1: memref<1xi32, #tpu.memory_space<smem>>, %arg2: memref<8x128xbf16, #tpu.memory_space<vmem>>, %arg3: memref<128x128xbf16, #tpu.memory_space<vmem>>, %arg4: memref<1x128xf32, #tpu.memory_space<vmem>>, %arg5: memref<128x128xbf16, #tpu.memory_space<vmem>>, %arg6: memref<1x128xf32, #tpu.memory_space<vmem>>, %arg7: memref<128x128xbf16, #tpu.memory_space<vmem>>, %arg8: memref<1x128xf32, #tpu.memory_space<vmem>>, %arg9: memref<8x128xf32, #tpu.memory_space<vmem>>) attributes {dimension_semantics = [#tpu.dimension_semantics<parallel>], iteration_bounds = array<i64: 1>, scalar_prefetch = 1 : i64, scratch_operands = 0 : i64, tpu.core_type = #tpu.core_type<tc>, window_params = [{transform_indices = @transform_0, window_bounds = array<i64: 8, 128>}, {pipeline_mode = #tpu.pipeline_mode<synchronous>, transform_indices = @transform_1, window_bounds = array<i64: 128, 128>}, {pipeline_mode = #tpu.pipeline_mode<synchronous>, transform_indices = @transform_2, window_bounds = array<i64: 1, 128>}, {pipeline_mode = #tpu.pipeline_mode<synchronous>, transform_indices = @transform_3, window_bounds = array<i64: 128, 128>}, {pipeline_mode = #tpu.pipeline_mode<synchronous>, transform_indices = @transform_4, window_bounds = array<i64: 1, 128>}, {pipeline_mode = #tpu.pipeline_mode<synchronous>, transform_indices = @transform_5, window_bounds = array<i64: 128, 128>}, {pipeline_mode = #tpu.pipeline_mode<synchronous>, transform_indices = @transform_6, window_bounds = array<i64: 1, 128>}, {transform_indices = @transform_7, window_bounds = array<i64: 8, 128>}]} {
    %c8_i32 = arith.constant 8 : i32
    %0 = arith.muli %arg0, %c8_i32 : i32
    %c0 = arith.constant 0 : index
    %1 = memref.load %arg1[%c0] : memref<1xi32, #tpu.memory_space<smem>>
    %c0_0 = arith.constant 0 : index
    %c0_1 = arith.constant 0 : index
    %2 = vector.load %arg2[%c0_0, %c0_1] : memref<8x128xbf16, #tpu.memory_space<vmem>>, vector<8x128xbf16>
    %c0_2 = arith.constant 0 : index
    %c0_3 = arith.constant 0 : index
    %3 = vector.load %arg3[%c0_2, %c0_3] : memref<128x128xbf16, #tpu.memory_space<vmem>>, vector<128x128xbf16>
    %cst = arith.constant dense<0.000000e+00> : vector<8x128xf32>
    %4 = tpu.matmul %2, %3, %cst {dimension_numbers = #tpu.dot_dimension_numbers<[1], [0], [0], [1], [0, 0, 1, 1], [], []>} : vector<8x128xbf16>, vector<128x128xbf16>, vector<8x128xf32> -> vector<8x128xf32>
    %c0_4 = arith.constant 0 : index
    %c0_5 = arith.constant 0 : index
    %5 = vector.load %arg4[%c0_4, %c0_5] : memref<1x128xf32, #tpu.memory_space<vmem>>, vector<1x128xf32>
    %6 = vector.broadcast %5 : vector<1x128xf32> to vector<8x128xf32>
    %7 = arith.addf %4, %6 : vector<8x128xf32>
    %cst_6 = arith.constant 0.000000e+00 : f32
    %8 = vector.broadcast %cst_6 : f32 to vector<8x128xf32>
    %9 = arith.maximumf %7, %8 : vector<8x128xf32>
    %10 = tpu.iota {dimensions = array<i32: 0>} : vector<8x128xi32>
    %11 = vector.broadcast %0 : i32 to vector<8x128xi32>
    %12 = arith.addi %10, %11 : vector<8x128xi32>
    %13 = tpu.iota {dimensions = array<i32: 1>} : vector<8x128xi32>
    %c-1640531535_i32 = arith.constant -1640531535 : i32
    %14 = vector.broadcast %c-1640531535_i32 : i32 to vector<8x128xi32>
    %15 = arith.muli %12, %14 : vector<8x128xi32>
    %c-2048144777_i32 = arith.constant -2048144777 : i32
    %16 = vector.broadcast %c-2048144777_i32 : i32 to vector<8x128xi32>
    %17 = arith.muli %13, %16 : vector<8x128xi32>
    %18 = arith.xori %15, %17 : vector<8x128xi32>
    %c-1028477379_i32 = arith.constant -1028477379 : i32
    %19 = arith.muli %1, %c-1028477379_i32 : i32
    %20 = vector.broadcast %19 : i32 to vector<8x128xi32>
    %21 = arith.xori %18, %20 : vector<8x128xi32>
    %c1013904242_i32 = arith.constant 1013904242 : i32
    %22 = vector.broadcast %c1013904242_i32 : i32 to vector<8x128xi32>
    %23 = arith.addi %21, %22 : vector<8x128xi32>
    %c16_i32 = arith.constant 16 : i32
    %24 = vector.broadcast %c16_i32 : i32 to vector<8x128xi32>
    %25 = arith.shrui %23, %24 : vector<8x128xi32>
    %26 = arith.xori %23, %25 : vector<8x128xi32>
    %c2146121005_i32 = arith.constant 2146121005 : i32
    %27 = vector.broadcast %c2146121005_i32 : i32 to vector<8x128xi32>
    %28 = arith.muli %26, %27 : vector<8x128xi32>
    %c15_i32 = arith.constant 15 : i32
    %29 = vector.broadcast %c15_i32 : i32 to vector<8x128xi32>
    %30 = arith.shrui %28, %29 : vector<8x128xi32>
    %31 = arith.xori %28, %30 : vector<8x128xi32>
    %c-2073254261_i32 = arith.constant -2073254261 : i32
    %32 = vector.broadcast %c-2073254261_i32 : i32 to vector<8x128xi32>
    %33 = arith.muli %31, %32 : vector<8x128xi32>
    %c16_i32_7 = arith.constant 16 : i32
    %34 = vector.broadcast %c16_i32_7 : i32 to vector<8x128xi32>
    %35 = arith.shrui %33, %34 : vector<8x128xi32>
    %36 = arith.xori %33, %35 : vector<8x128xi32>
    %c1_i32 = arith.constant 1 : i32
    %37 = vector.broadcast %c1_i32 : i32 to vector<8x128xi32>
    %38 = arith.shrui %36, %37 : vector<8x128xi32>
    %c1073741824_i32 = arith.constant 1073741824 : i32
    %39 = vector.broadcast %c1073741824_i32 : i32 to vector<8x128xi32>
    %40 = arith.cmpi sge, %38, %39 : vector<8x128xi32>
    %cst_8 = arith.constant 2.000000e+00 : f32
    %41 = vector.broadcast %cst_8 : f32 to vector<8x128xf32>
    %42 = arith.mulf %9, %41 : vector<8x128xf32>
    %cst_9 = arith.constant 0.000000e+00 : f32
    %43 = vector.broadcast %cst_9 : f32 to vector<8x128xf32>
    %44 = arith.select %40, %42, %43 : vector<8x128xi1>, vector<8x128xf32>
    %45 = arith.truncf %44 : vector<8x128xf32> to vector<8x128xbf16>
    %c0_10 = arith.constant 0 : index
    %c0_11 = arith.constant 0 : index
    %46 = vector.load %arg5[%c0_10, %c0_11] : memref<128x128xbf16, #tpu.memory_space<vmem>>, vector<128x128xbf16>
    %cst_12 = arith.constant dense<0.000000e+00> : vector<8x128xf32>
    %47 = tpu.matmul %45, %46, %cst_12 {dimension_numbers = #tpu.dot_dimension_numbers<[1], [0], [0], [1], [0, 0, 1, 1], [], []>} : vector<8x128xbf16>, vector<128x128xbf16>, vector<8x128xf32> -> vector<8x128xf32>
    %c0_13 = arith.constant 0 : index
    %c0_14 = arith.constant 0 : index
    %48 = vector.load %arg6[%c0_13, %c0_14] : memref<1x128xf32, #tpu.memory_space<vmem>>, vector<1x128xf32>
    %49 = vector.broadcast %48 : vector<1x128xf32> to vector<8x128xf32>
    %50 = arith.addf %47, %49 : vector<8x128xf32>
    %cst_15 = arith.constant 0.000000e+00 : f32
    %51 = vector.broadcast %cst_15 : f32 to vector<8x128xf32>
    %52 = arith.maximumf %50, %51 : vector<8x128xf32>
    %53 = tpu.iota {dimensions = array<i32: 0>} : vector<8x128xi32>
    %54 = vector.broadcast %0 : i32 to vector<8x128xi32>
    %55 = arith.addi %53, %54 : vector<8x128xi32>
    %56 = tpu.iota {dimensions = array<i32: 1>} : vector<8x128xi32>
    %c-1640531535_i32_16 = arith.constant -1640531535 : i32
    %57 = vector.broadcast %c-1640531535_i32_16 : i32 to vector<8x128xi32>
    %58 = arith.muli %55, %57 : vector<8x128xi32>
    %c-2048144777_i32_17 = arith.constant -2048144777 : i32
    %59 = vector.broadcast %c-2048144777_i32_17 : i32 to vector<8x128xi32>
    %60 = arith.muli %56, %59 : vector<8x128xi32>
    %61 = arith.xori %58, %60 : vector<8x128xi32>
    %c-1028477379_i32_18 = arith.constant -1028477379 : i32
    %62 = arith.muli %1, %c-1028477379_i32_18 : i32
    %63 = vector.broadcast %62 : i32 to vector<8x128xi32>
    %64 = arith.xori %61, %63 : vector<8x128xi32>
    %c1640531527_i32 = arith.constant 1640531527 : i32
    %65 = vector.broadcast %c1640531527_i32 : i32 to vector<8x128xi32>
    %66 = arith.addi %64, %65 : vector<8x128xi32>
    %c16_i32_19 = arith.constant 16 : i32
    %67 = vector.broadcast %c16_i32_19 : i32 to vector<8x128xi32>
    %68 = arith.shrui %66, %67 : vector<8x128xi32>
    %69 = arith.xori %66, %68 : vector<8x128xi32>
    %c2146121005_i32_20 = arith.constant 2146121005 : i32
    %70 = vector.broadcast %c2146121005_i32_20 : i32 to vector<8x128xi32>
    %71 = arith.muli %69, %70 : vector<8x128xi32>
    %c15_i32_21 = arith.constant 15 : i32
    %72 = vector.broadcast %c15_i32_21 : i32 to vector<8x128xi32>
    %73 = arith.shrui %71, %72 : vector<8x128xi32>
    %74 = arith.xori %71, %73 : vector<8x128xi32>
    %c-2073254261_i32_22 = arith.constant -2073254261 : i32
    %75 = vector.broadcast %c-2073254261_i32_22 : i32 to vector<8x128xi32>
    %76 = arith.muli %74, %75 : vector<8x128xi32>
    %c16_i32_23 = arith.constant 16 : i32
    %77 = vector.broadcast %c16_i32_23 : i32 to vector<8x128xi32>
    %78 = arith.shrui %76, %77 : vector<8x128xi32>
    %79 = arith.xori %76, %78 : vector<8x128xi32>
    %c1_i32_24 = arith.constant 1 : i32
    %80 = vector.broadcast %c1_i32_24 : i32 to vector<8x128xi32>
    %81 = arith.shrui %79, %80 : vector<8x128xi32>
    %c1073741824_i32_25 = arith.constant 1073741824 : i32
    %82 = vector.broadcast %c1073741824_i32_25 : i32 to vector<8x128xi32>
    %83 = arith.cmpi sge, %81, %82 : vector<8x128xi32>
    %cst_26 = arith.constant 2.000000e+00 : f32
    %84 = vector.broadcast %cst_26 : f32 to vector<8x128xf32>
    %85 = arith.mulf %52, %84 : vector<8x128xf32>
    %cst_27 = arith.constant 0.000000e+00 : f32
    %86 = vector.broadcast %cst_27 : f32 to vector<8x128xf32>
    %87 = arith.select %83, %85, %86 : vector<8x128xi1>, vector<8x128xf32>
    %88 = arith.truncf %87 : vector<8x128xf32> to vector<8x128xbf16>
    %c0_28 = arith.constant 0 : index
    %c0_29 = arith.constant 0 : index
    %89 = vector.load %arg7[%c0_28, %c0_29] : memref<128x128xbf16, #tpu.memory_space<vmem>>, vector<128x128xbf16>
    %cst_30 = arith.constant dense<0.000000e+00> : vector<8x128xf32>
    %90 = tpu.matmul %88, %89, %cst_30 {dimension_numbers = #tpu.dot_dimension_numbers<[1], [0], [0], [1], [0, 0, 1, 1], [], []>} : vector<8x128xbf16>, vector<128x128xbf16>, vector<8x128xf32> -> vector<8x128xf32>
    %c0_31 = arith.constant 0 : index
    %c0_32 = arith.constant 0 : index
    %91 = vector.load %arg8[%c0_31, %c0_32] : memref<1x128xf32, #tpu.memory_space<vmem>>, vector<1x128xf32>
    %92 = vector.broadcast %91 : vector<1x128xf32> to vector<8x128xf32>
    %93 = arith.addf %90, %92 : vector<8x128xf32>
    %c0_33 = arith.constant 0 : index
    %c0_34 = arith.constant 0 : index
    %94 = vector.load %arg9[%c0_33, %c0_34] : memref<8x128xf32, #tpu.memory_space<vmem>>, vector<8x128xf32>
    tpu.vector_store %arg9[%c0_33, %c0_34], %93 {strides = array<i32>} : memref<8x128xf32, #tpu.memory_space<vmem>>, vector<8x128xf32>,
    return
  }
  func.func @transform_0(%arg0: i32, %arg1: memref<1xi32, #tpu.memory_space<smem>>) -> (i32, i32) {
    %c0_i32 = arith.constant 0 : i32
    %c0_i32_0 = arith.constant 0 : i32
    return %arg0, %c0_i32 : i32, i32
  }
  func.func @transform_1(%arg0: i32, %arg1: memref<1xi32, #tpu.memory_space<smem>>) -> (i32, i32) {
    %c0_i32 = arith.constant 0 : i32
    %c0_i32_0 = arith.constant 0 : i32
    %c0_i32_1 = arith.constant 0 : i32
    return %c0_i32, %c0_i32_0 : i32, i32
  }
  func.func @transform_2(%arg0: i32, %arg1: memref<1xi32, #tpu.memory_space<smem>>) -> (i32, i32) {
    %c0_i32 = arith.constant 0 : i32
    %c0_i32_0 = arith.constant 0 : i32
    %c0_i32_1 = arith.constant 0 : i32
    return %c0_i32, %c0_i32_0 : i32, i32
  }
  func.func @transform_3(%arg0: i32, %arg1: memref<1xi32, #tpu.memory_space<smem>>) -> (i32, i32) {
    %c0_i32 = arith.constant 0 : i32
    %c0_i32_0 = arith.constant 0 : i32
    %c0_i32_1 = arith.constant 0 : i32
    return %c0_i32, %c0_i32_0 : i32, i32
  }
  func.func @transform_4(%arg0: i32, %arg1: memref<1xi32, #tpu.memory_space<smem>>) -> (i32, i32) {
    %c0_i32 = arith.constant 0 : i32
    %c0_i32_0 = arith.constant 0 : i32
    %c0_i32_1 = arith.constant 0 : i32
    return %c0_i32, %c0_i32_0 : i32, i32
  }
  func.func @transform_5(%arg0: i32, %arg1: memref<1xi32, #tpu.memory_space<smem>>) -> (i32, i32) {
    %c0_i32 = arith.constant 0 : i32
    %c0_i32_0 = arith.constant 0 : i32
    %c0_i32_1 = arith.constant 0 : i32
    return %c0_i32, %c0_i32_0 : i32, i32
  }
  func.func @transform_6(%arg0: i32, %arg1: memref<1xi32, #tpu.memory_space<smem>>) -> (i32, i32) {
    %c0_i32 = arith.constant 0 : i32
    %c0_i32_0 = arith.constant 0 : i32
    %c0_i32_1 = arith.constant 0 : i32
    return %c0_i32, %c0_i32_0 : i32, i32
  }
  func.func @transform_7(%arg0: i32, %arg1: memref<1xi32, #tpu.memory_space<smem>>) -> (i32, i32) {
    %c0_i32 = arith.constant 0 : i32
    %c0_i32_0 = arith.constant 0 : i32
    return %arg0, %c0_i32 : i32, i32
  }
}

</mosaic_0001>

<bundles_post_ra>
// kernel: tpu_custom_call.1
= control target key start
LH: loop header
LB: loop body
LE: loop exit
PB: predicated region body
PF: predicated region fallthrough
CT: control target
= control target key end

     0   :  { %14 = vsyncpa [#allocation5], 0  ;;  %s915_s0 = inlined_call_operand.<no memory space> [shape: s32[1], index: 0, kind: input, shape index: {}]   ;;  %s916_s1 = inlined_call_operand.hbm [shape: bf16[8,128], index: 1, kind: input, shape index: {}]   ;;  %s917_s2 = inlined_call_operand.hbm [shape: bf16[128,128], index: 2, kind: input, shape index: {}]   ;;  %s918_s3 = inlined_call_operand.vmem [shape: f32[1,128], index: 3, kind: input, shape index: {}]   ;;  %s919_s4 = inlined_call_operand.hbm [shape: bf16[128,128], index: 4, kind: input, shape index: {}]   ;;  %s920_s5 = inlined_call_operand.vmem [shape: f32[1,128], index: 5, kind: input, shape index: {}]   ;;  %s921_s6 = inlined_call_operand.hbm [shape: bf16[128,128], index: 6, kind: input, shape index: {}]   ;;  %s922_s7 = inlined_call_operand.vmem [shape: f32[1,128], index: 7, kind: input, shape index: {}]   ;;  %s923_s8 = inlined_call_operand.hbm [shape: f32[8,128], index: 8, kind: output, shape index: {}]  }
   0x1   :  { %15 = vsyncpa [#allocation8], 0 }
   0x2   :  { %16 = vsyncpa [#allocation11], 0 }
   0x3   :  { %17 = vsyncpa [#allocation6], 0  ;;  %s750_s27 = smov [#allocation7]   ;;  %s632_s9 = scalar_lea.hbm %s917_s2, 1024 }
   0x4   :  { %s33_s28 = sshll.u32 %s750_s27, 4  ;;  %p633_p0 = scmp.ne.s32.totalorder %s917_s2, %s632_s9  ;;  %s34_s28 = int_to_ptr.vmem [resolvable:$true] %s33_s28 }
   0x5   :  { %p636_p1 = scmp.lt.u32.totalorder %s632_s9, %s917_s2 }
   0x7   :  { %p638_p2 = pnand %p636_p1, %p633_p0 }
   0x9   :  { %641 = shalt.err (!%p638_p2)
}
   0xa   :  { %s642_s14 = scalar_lea.vmem %s34_s28, 1024  ;;  %p647_p4 = scmp.lt.s32.totalorder %s34_s28, %s34_s28 }
   0xb   :  { %p643_p3 = scmp.ne.s32.totalorder %s34_s28, %s642_s14  ;;  %p648_p5 = scmp.lt.s32.totalorder %s642_s14, %s642_s14 }
   0xd   :  { %p649_p6 = por %p648_p5, %p647_p4 }
   0xf   :  { %p650_p7 = pnand %p649_p6, %p643_p3 }
  0x11   :  { %653 = shalt.err (!%p650_p7)
}
  0x12   :  { %s751_s15 = smov 64   ;;  %s752_s16 = smov 4  }
  0x13   :  { %39 = dma.hbm_to_vmem [thread:$0]  %s917_s2, 1024, %s34_s28, [#allocation8], %s751_s15, %s751_s15, %s752_s16  }
  0x14   :  { %s753_s19 = smov [#allocation4]   ;;  %s754_s21 = smov [#allocation9]  }
  0x15   :  { %s24_s20 = sshll.u32 %s753_s19, 4  ;;  %s47_s22 = sshll.u32 %s754_s21, 4  ;;  %s25_s20 = int_to_ptr.vmem [resolvable:$true] %s24_s20  ;;  %s48_s22 = int_to_ptr.vmem [resolvable:$true] %s47_s22 }
  0x16   :  { %s654_s25 = scalar_lea.hbm %s916_s1, 64 }
  0x17   :  { %p655_p8 = scmp.ne.s32.totalorder %s916_s1, %s654_s25  ;;  %p658_p9 = scmp.lt.u32.totalorder %s654_s25, %s916_s1 }
  0x19   :  { %p660_p10 = pnand %p658_p9, %p655_p8 }
  0x1b   :  { %663 = shalt.err (!%p660_p10)
}
  0x1c   :  { %s664_s2 = scalar_lea.vmem %s25_s20, 64  ;;  %p669_p12 = scmp.lt.s32.totalorder %s25_s20, %s25_s20 }
  0x1d   :  { %p665_p11 = scmp.ne.s32.totalorder %s25_s20, %s664_s2  ;;  %p670_p13 = scmp.lt.s32.totalorder %s664_s2, %s664_s2 }
  0x1f   :  { %p671_p0 = por %p670_p13, %p669_p12 }
  0x21   :  { %p672_p1 = pnand %p671_p0, %p665_p11 }
  0x23   :  { %675 = shalt.err (!%p672_p1)
}
  0x24   :  { %27 = dma.hbm_to_vmem [thread:$0]  %s916_s1, 64, %s25_s20, [#allocation5]  }
  0x25   :  { %s676_s12 = scalar_lea.hbm %s919_s4, 1024 }
  0x26   :  { %p677_p2 = scmp.ne.s32.totalorder %s919_s4, %s676_s12  ;;  %p680_p3 = scmp.lt.u32.totalorder %s676_s12, %s919_s4 }
  0x28   :  { %p682_p4 = pnand %p680_p3, %p677_p2 }
  0x2a   :  { %685 = shalt.err (!%p682_p4)
}
  0x2b   :  { %s686_s19 = scalar_lea.vmem %s48_s22, 1024  ;;  %p691_p6 = scmp.lt.s32.totalorder %s48_s22, %s48_s22 }
  0x2c   :  { %p687_p5 = scmp.ne.s32.totalorder %s48_s22, %s686_s19  ;;  %p692_p7 = scmp.lt.s32.totalorder %s686_s19, %s686_s19 }
  0x2e   :  { %p693_p8 = por %p692_p7, %p691_p6 }
  0x30   :  { %p694_p9 = pnand %p693_p8, %p687_p5 }
  0x32   :  { %697 = shalt.err (!%p694_p9)
}
  0x33   :  { %53 = dma.hbm_to_vmem [thread:$0]  %s919_s4, 1024, %s48_s22, [#allocation8], %s751_s15, %s751_s15, %s752_s16  }
  0x34   :  { %s755_s21 = smov [#allocation10]   ;;  %s698_s26 = scalar_lea.hbm %s921_s6, 1024 }
  0x35   :  { %s61_s23 = sshll.u32 %s755_s21, 4  ;;  %p699_p10 = scmp.ne.s32.totalorder %s921_s6, %s698_s26  ;;  %s62_s23 = int_to_ptr.vmem [resolvable:$true] %s61_s23 }
  0x36   :  { %p702_p11 = scmp.lt.u32.totalorder %s698_s26, %s921_s6 }
  0x38   :  { %p704_p12 = pnand %p702_p11, %p699_p10 }
  0x3a   :  { %707 = shalt.err (!%p704_p12)
}
  0x3b   :  { %s708_s28 = scalar_lea.vmem %s62_s23, 1024  ;;  %p713_p0 = scmp.lt.s32.totalorder %s62_s23, %s62_s23 }
  0x3c   :  { %p709_p13 = scmp.ne.s32.totalorder %s62_s23, %s708_s28  ;;  %p714_p1 = scmp.lt.s32.totalorder %s708_s28, %s708_s28 }
  0x3e   :  { %p715_p2 = por %p714_p1, %p713_p0 }
  0x40   :  { %p716_p3 = pnand %p715_p2, %p709_p13 }
  0x42   :  { %719 = shalt.err (!%p716_p3)
}
  0x43   :  { %67 = dma.hbm_to_vmem [thread:$0]  %s921_s6, 1024, %s62_s23, [#allocation11], %s751_s15, %s751_s15, %s752_s16  }
  0x44   :  { %742 = dma.done.wait [#allocation5], 64  }
  0x45   :  { %743 = vsyncadd [#allocation5], 4294967232 }
  0x46   :  { %744 = dma.done.wait [#allocation8], 2048  }
  0x47   :  { %745 = vsyncadd [#allocation8], 4294965248 }
  0x48   :  { %746 = dma.done.wait [#allocation11], 1024  }
  0x49   :  { %747 = vsyncadd [#allocation11], 4294966272  ;;  %v756_v0 = vmov 0.0   ;;  %vm757_vm0 = vmmov 0   ;;  %v608_v1 = vld [vmem:[#allocation7] sm:$0xff]   ;;  %v609_v2 = vld [vmem:[#allocation7 + $0x8] sm:$0xff]   ;;  %v198_v24 = vlaneseq }
  0x4a   :  { %539 = vmatprep.subr.bf16.mxu0 %v756_v0  ;;  %555 = vmatprep.mubr.msk.bf16.mxu0 %vm757_vm0, %v756_v0  ;;  %v610_v3 = vld [vmem:[#allocation7 + $0x10] sm:$0xff]   ;;  %v616_v4 = vld [vmem:[#allocation9] sm:$0xff]   ;;  %v611_v5 = vld [vmem:[#allocation7 + $0x18] sm:$0xff]   ;;  %s207_s16 = smul.u32 3266489917, %s915_s0  ;;  %s758_s13 = smov [#allocation12]  }
  0x4b   :  { %559 = vmatprep.subr.bf16.mxu1 %v756_v0  ;;  %575 = vmatprep.mubr.msk.bf16.mxu1 %vm757_vm0, %v756_v0  ;;  %v617_v6 = vld [vmem:[#allocation9 + $0x8] sm:$0xff]   ;;  %v612_v7 = vld [vmem:[#allocation7 + $0x20] sm:$0xff]   ;;  %v618_v8 = vld [vmem:[#allocation9 + $0x10] sm:$0xff]   ;;  %v199_v25 = vshrl.u32 %v198_v24, 7  ;;  %v203_v26 = vand.u32 127, %v198_v24  ;;  %s468_s14 = sshll.u32 %s758_s13, 4  ;;  %s469_s14 = int_to_ptr.vmem [resolvable:$true] %s468_s14 }
  0x4c   :  { %540 = vmatpush3.bf16.msra.mxu0 %v608_v1  ;;  %560 = vmatpush3.bf16.msra.mxu1 %v616_v4  ;;  %v613_v9 = vld [vmem:[#allocation7 + $0x28] sm:$0xff]   ;;  %v619_v10 = vld [vmem:[#allocation9 + $0x18] sm:$0xff]   ;;  %v614_v11 = vld [vmem:[#allocation7 + $0x30] sm:$0xff]   ;;  %v208_v30 = vstv %s207_s16  ;;  %p725_p5 = scmp.lt.s32.totalorder %s469_s14, %s469_s14 }
  0x4d   :  { %541 = vmatprep.subr.bf16.mxu0 %v756_v0  ;;  %561 = vmatprep.subr.bf16.mxu1 %v756_v0  ;;  %v620_v12 = vld [vmem:[#allocation9 + $0x20] sm:$0xff]   ;;  %v615_v13 = vld [vmem:[#allocation7 + $0x38] sm:$0xff]   ;;  %v621_v14 = vld [vmem:[#allocation9 + $0x28] sm:$0xff]   ;;  %v204_v27 = vmul.u32 2654435761, %v199_v25 }
  0x4e   :  { %v85_v15 = vld [vmem:[#allocation4] sm:$0xf]  ;;  %v622_v16 = vld [vmem:[#allocation9 + $0x30] sm:$0xff]   ;;  %v624_v18 = vld [vmem:[#allocation10] sm:$0xff]   ;;  %v205_v28 = vmul.u32 2246822519, %v203_v26 }
  0x4f   :  { %v623_v17 = vld [vmem:[#allocation9 + $0x38] sm:$0xff]   ;;  %v625_v19 = vld [vmem:[#allocation10 + $0x8] sm:$0xff]   ;;  %v626_v20 = vld [vmem:[#allocation10 + $0x10] sm:$0xff]  }
  0x50   :  { %542 = vmatpush3.bf16.msra.mxu0 %v609_v2  ;;  %562 = vmatpush3.bf16.msra.mxu1 %v617_v6  ;;  %v627_v21 = vld [vmem:[#allocation10 + $0x18] sm:$0xff]   ;;  %v628_v22 = vld [vmem:[#allocation10 + $0x20] sm:$0xff]   ;;  %v629_v23 = vld [vmem:[#allocation10 + $0x28] sm:$0xff]   ;;  %v206_v29 = vxor.u32 %v205_v28, %v204_v27 }
  0x51   :  { %543 = vmatprep.subr.bf16.mxu0 %v756_v0  ;;  %563 = vmatprep.subr.bf16.mxu1 %v756_v0  ;;  %v479_v41 = vld [vmem:[%s918_s3] ss:$0 sm:$0xff]  ;;  %v630_v51 = vld [vmem:[#allocation10 + $0x30] sm:$0xff]  }
  0x52   :  { %v209_v31 = vxor.u32 %v208_v30, %v206_v29  ;;  %v631_v52 = vld [vmem:[#allocation10 + $0x38] sm:$0xff]  }
  0x53   :  { %v488_v62 = vld [vmem:[%s920_s5] ss:$0 sm:$0xff]  ;;  %s720_s5 = scalar_lea.vmem %s469_s14, 128 }
  0x54   :  { %544 = vmatpush3.bf16.msra.mxu0 %v610_v3  ;;  %564 = vmatpush3.bf16.msra.mxu1 %v618_v8  ;;  %v210_v32 = vadd.s32 1013904242, %v209_v31  ;;  %v336_v53 = vadd.s32 1640531527, %v209_v31  ;;  %v500_v8 = vld [vmem:[%s922_s7] ss:$0 sm:$0xff]  ;;  %p721_p4 = scmp.ne.s32.totalorder %s469_s14, %s720_s5  ;;  %p726_p6 = scmp.lt.s32.totalorder %s720_s5, %s720_s5 }
  0x55   :  { %545 = vmatprep.subr.bf16.mxu0 %v756_v0  ;;  %565 = vmatprep.subr.bf16.mxu1 %v756_v0 }
  0x56   :  { %v211_v33 = vshrl.u32 %v210_v32, 16  ;;  %v337_v54 = vshrl.u32 %v336_v53, 16  ;;  %p727_p7 = por %p726_p6, %p725_p5 }
  0x58   :  { %546 = vmatpush3.bf16.msra.mxu0 %v611_v5  ;;  %566 = vmatpush3.bf16.msra.mxu1 %v619_v10  ;;  %v212_v34 = vxor.u32 %v211_v33, %v210_v32  ;;  %v338_v55 = vxor.u32 %v337_v54, %v336_v53  ;;  %p728_p8 = pnand %p727_p7, %p721_p4 }
  0x59   :  { %547 = vmatprep.subr.bf16.mxu0 %v756_v0  ;;  %567 = vmatprep.subr.bf16.mxu1 %v756_v0 }
  0x5a   :  { %v213_v35 = vmul.u32 2146121005, %v212_v34  ;;  %v339_v56 = vmul.u32 2146121005, %v338_v55 }
  0x5c   :  { %548 = vmatpush3.bf16.msra.mxu0 %v612_v7  ;;  %568 = vmatpush3.bf16.msra.mxu1 %v620_v12  ;;  %v214_v36 = vshrl.u32 %v213_v35, 15  ;;  %v340_v57 = vshrl.u32 %v339_v56, 15 }
  0x5d   :  { %549 = vmatprep.subr.bf16.mxu0 %v756_v0  ;;  %569 = vmatprep.subr.bf16.mxu1 %v756_v0 }
  0x5e   :  { %v215_v37 = vxor.u32 %v214_v36, %v213_v35  ;;  %v341_v58 = vxor.u32 %v340_v57, %v339_v56 }
  0x60   :  { %550 = vmatpush3.bf16.msra.mxu0 %v613_v9  ;;  %570 = vmatpush3.bf16.msra.mxu1 %v621_v14  ;;  %v216_v38 = vmul.u32 2221713035, %v215_v37  ;;  %v342_v59 = vmul.u32 2221713035, %v341_v58 }
  0x61   :  { %551 = vmatprep.subr.bf16.mxu0 %v756_v0  ;;  %571 = vmatprep.subr.bf16.mxu1 %v756_v0 }
  0x62   :  { %v217_v39 = vshrl.u32 %v216_v38, 16  ;;  %v343_v60 = vshrl.u32 %v342_v59, 16 }
  0x64   :  { %552 = vmatpush3.bf16.msra.mxu0 %v614_v11  ;;  %572 = vmatpush3.bf16.msra.mxu1 %v622_v16  ;;  %v218_v40 = vxor.u32 %v217_v39, %v216_v38  ;;  %v344_v61 = vxor.u32 %v343_v60, %v342_v59 }
  0x65   :  { %553 = vmatprep.subr.bf16.mxu0 %v756_v0  ;;  %573 = vmatprep.subr.bf16.mxu1 %v756_v0 }
  0x66   :  { %v219_v42 = vshrl.u32 %v218_v40, 1  ;;  %v345_v63 = vshrl.u32 %v344_v61, 1 }
  0x68   :  { %554 = vmatpush3.bf16.msra.mxu0 %v615_v13  ;;  %574 = vmatpush3.bf16.msra.mxu1 %v623_v17  ;;  %vm220_vm1 = vcmp.ge.s32.totalorder %v219_v42, 1073741824  ;;  %vm346_vm3 = vcmp.ge.s32.totalorder %v345_v63, 1073741824 }
  0x69   :  { %579 = vmatprep.subr.bf16.mxu0 %v756_v0  ;;  %vm497_vm2 = vmpackc.low %vm220_vm1, %vm220_vm1 }
  0x6a   :  { %vm509_vm4 = vmpackc.low %vm346_vm3, %vm346_vm3 }
  0x6b   :  { %556 = vmatmul.mubr.bf16.vlgmr.msra.gmra.mrb[0].mxu0 %v85_v15 }
  0x6c   :  { %595 = vmatprep.mubr.msk.bf16.mxu0 %vm757_vm0, %v756_v0  ;;  %580 = vmatpush3.bf16.msra.mxu0 %v624_v18 }
  0x6d   :  { %581 = vmatprep.subr.bf16.mxu0 %v756_v0 }
  0x70   :  { %582 = vmatpush3.bf16.msra.mxu0 %v625_v19 }
  0x71   :  { %583 = vmatprep.subr.bf16.mxu0 %v756_v0 }
  0x74   :  { %584 = vmatpush3.bf16.msra.mxu0 %v626_v20 }
  0x75   :  { %585 = vmatprep.subr.bf16.mxu0 %v756_v0 }
  0x78   :  { %586 = vmatpush3.bf16.msra.mxu0 %v627_v21 }
  0x79   :  { %587 = vmatprep.subr.bf16.mxu0 %v756_v0 }
  0x7c   :  { %588 = vmatpush3.bf16.msra.mxu0 %v628_v22 }
  0x7d   :  { %589 = vmatprep.subr.bf16.mxu0 %v756_v0 }
  0x80   :  { %590 = vmatpush3.bf16.msra.mxu0 %v629_v23 }
  0x81   :  { %591 = vmatprep.subr.bf16.mxu0 %v756_v0 }
  0x84   :  { %592 = vmatpush3.bf16.msra.mxu0 %v630_v51 }
  0x85   :  { %593 = vmatprep.subr.bf16.mxu0 %v756_v0 }
  0x88   :  { %594 = vmatpush3.bf16.msra.mxu0 %v631_v52 }
 0x13e   :  { %v191_v43 = vpop.f32.mrb[0].mxu0 }
 0x13f   :  { %v192_v44 = vadd.f32 %v479_v41, %v191_v43  ;;  %v557_v45 = vpop.f32.mrb[1].mxu0 }
 0x140   :  { %v194_v46 = vpop.f32.mrb[2].mxu0 }
 0x141   :  { %v197_v47 = vmax.f32 %v192_v44, 0.0  ;;  %v558_v48 = vpop.f32.mrb[3].mxu0 }
 0x143   :  { %v221_v49 = vmul.f32 2.0, %v197_v47 }
 0x145   :  { %v498_v50 = vpack.c.bf16 %v221_v49, %v221_v49 }
 0x147   :  { %576 = vmatmul.mubr.msk.bf16.vlgmr.msra.gmra.mrb[0].mxu1 %vm497_vm2, %v498_v50 }
 0x21a   :  { %v329_v1 = vpop.f32.mrb[0].mxu1 }
 0x21b   :  { %v330_v2 = vadd.f32 %v488_v62, %v329_v1  ;;  %v577_v3 = vpop.f32.mrb[1].mxu1 }
 0x21c   :  { %v332_v0 = vpop.f32.mrb[2].mxu1 }
 0x21d   :  { %v335_v4 = vmax.f32 %v330_v2, 0.0  ;;  %v578_v5 = vpop.f32.mrb[3].mxu1 }
 0x21f   :  { %v347_v6 = vmul.f32 2.0, %v335_v4 }
 0x221   :  { %v510_v7 = vpack.c.bf16 %v347_v6, %v347_v6 }
 0x223   :  { %596 = vmatmul.mubr.msk.bf16.vlgmr.msra.gmra.mrb[4].mxu0 %vm509_vm4, %v510_v7 }
 0x2f6   :  { %v455_v9 = vpop.f32.mrb[4].mxu0 }
 0x2f7   :  { %v456_v10 = vadd.f32 %v500_v8, %v455_v9  ;;  %v597_v11 = vpop.f32.mrb[5].mxu0 }
 0x2f8   :  { %v458_v12 = vpop.f32.mrb[6].mxu0 }
 0x2f9   :  { %461 = vst [vmem:[#allocation12] sm:$0xff] %v456_v10  ;;  %v598_v13 = vpop.f32.mrb[7].mxu0 }
 0x2fa   :  { %731 = shalt.err (!%p728_p8)
}
 0x2fb   :  { %s732_s7 = scalar_lea.hbm %s923_s8, 128 }
 0x2fc   :  { %p733_p9 = scmp.ne.s32.totalorder %s923_s8, %s732_s7  ;;  %p736_p10 = scmp.lt.u32.totalorder %s732_s7, %s923_s8 }
 0x2fe   :  { %p738_p11 = pnand %p736_p10, %p733_p9 }
 0x300   :  { %741 = shalt.err (!%p738_p11)
}
 0x301   :  { %471 = dma.vmem_to_hbm [thread:$0]  %s469_s14, 128, %s923_s8, [#allocation6]  }
 0x302   :  { %748 = dma.done.wait [#allocation6], 128  }
 0x303   :  { %749 = vsyncadd [#allocation6], 4294967168 }
 0x304   :  { %475 = vsyncpa [#allocation5], 1 }
 0x305   :  { %476 = vsyncpa [#allocation8], 1 }
 0x306   :  { %477 = vsyncpa [#allocation11], 1 }
 0x307   :  { %478 = vsyncpa [#allocation6], 1 }

</bundles_post_ra>
